<compile_context>
chip_gen: v5e
topology: v5e:2x2
jax: 0.10.0
libtpu: 0.0.40
codegen_flags: <defaults>
</compile_context>

<pallas_src>
import jax
import jax.numpy as jnp
from jax.experimental import pallas as pl
from jax.experimental.pallas import tpu as pltpu

BETA = 3.0
ALPHA = 2.0

# Below this much work, per-pallas_call overhead dominates -> let XLA fuse it.
_PALLAS_MIN_WORK = 1 << 22


def _round_up(x, m):
    return ((x + m - 1) // m) * m


def _addmm_kernel(bias_ref, m1_ref, m2_ref, out_ref, acc_ref):
    """out = BETA*bias + ALPHA*(m1 @ m2). Grid = (M/tm, N/tn, K/tk), K last."""
    k = pl.program_id(2)

    @pl.when(k == 0)
    def _init():
        acc_ref[...] = jnp.zeros_like(acc_ref)

    acc_ref[...] += jnp.dot(m1_ref[...], m2_ref[...],
                            preferred_element_type=jnp.float32)

    @pl.when(k == pl.num_programs(2) - 1)
    def _epilogue():
        # bias block is (tm, tn) or (1, tn); numpy broadcasting covers both.
        out_ref[...] = (BETA * bias_ref[...].astype(jnp.float32)
                        + ALPHA * acc_ref[...]).astype(out_ref.dtype)


def _addmm_pallas(bias, m1, m2, out_dtype, *, tm=128, tn=128, tk=256):
    # NOTE: tm/tn/tk can be raised (e.g. 256/512-class, bf16 operands) for
    # production sizes; re-derive the VMEM budget on v7x (64 MiB) before doing so.
    M, K = m1.shape
    _, N = m2.shape

    Mp, Np, Kp = _round_up(M, tm), _round_up(N, tn), _round_up(K, tk)

    # Zero-pad operands to tile multiples; padded output rows/cols sliced off.
    if (Mp, Kp) != (M, K):
        m1 = jnp.pad(m1, ((0, Mp - M), (0, Kp - K)))
    if (Kp, Np) != (K, N):
        m2 = jnp.pad(m2, ((0, Kp - K), (0, Np - N)))

    # Bias stays un-materialized (no MxN broadcast copy in HBM).
    bias2d = bias if bias.ndim == 2 else bias.reshape(1, -1)
    if bias2d.shape[0] == 1:
        if bias2d.shape[1] != Np:
            bias2d = jnp.pad(bias2d, ((0, 0), (0, Np - bias2d.shape[1])))
        bias_spec = pl.BlockSpec((1, tn), lambda i, j, k: (0, j))
    else:
        if bias2d.shape != (Mp, Np):
            bias2d = jnp.pad(bias2d, ((0, Mp - M), (0, Np - N)))
        bias_spec = pl.BlockSpec((tm, tn), lambda i, j, k: (i, j))

    grid = (Mp // tm, Np // tn, Kp // tk)

    cost = pl.CostEstimate(
        flops=2 * Mp * Np * Kp + 3 * Mp * Np,
        transcendentals=0,
        bytes_accessed=int(m1.size * m1.dtype.itemsize
                           + m2.size * m2.dtype.itemsize
                           + bias2d.size * bias2d.dtype.itemsize
                           + Mp * Np * jnp.dtype(out_dtype).itemsize),
    )

    out = pl.pallas_call(
        _addmm_kernel,
        out_shape=jax.ShapeDtypeStruct((Mp, Np), out_dtype),
        grid_spec=pltpu.PrefetchScalarGridSpec(
            num_scalar_prefetch=0,
            grid=grid,
            in_specs=[
                bias_spec,
                pl.BlockSpec((tm, tk), lambda i, j, k: (i, k)),
                pl.BlockSpec((tk, tn), lambda i, j, k: (k, j)),
            ],
            out_specs=pl.BlockSpec((tm, tn), lambda i, j, k: (i, j)),
            scratch_shapes=[pltpu.VMEM((tm, tn), jnp.float32)],
        ),
        compiler_params=pltpu.CompilerParams(
            dimension_semantics=("parallel", "parallel", "arbitrary")),
        cost_estimate=cost,
    )(bias2d, m1, m2)

    if (Mp, Np) != (M, N):
        out = out[:M, :N]
    return out


def addmm(input_, m1, m2):
    """Pallas/TPU equivalent of torch.addmm(input, m1, m2, beta=3, alpha=2)."""
    M, K = m1.shape
    K2, N = m2.shape
    assert K == K2, "inner dims must match"
    out_dtype = jnp.result_type(input_.dtype, m1.dtype, m2.dtype)

    if M * N * K < _PALLAS_MIN_WORK:
        # Tiny problem: skip Pallas, let XLA fuse scale+add with the matmul.
        return (BETA * input_.astype(jnp.float32)
                + ALPHA * jnp.dot(m1, m2, preferred_element_type=jnp.float32)
                ).astype(out_dtype)

    return _addmm_pallas(input_, m1, m2, out_dtype)


if __name__ == "__main__":
    key = jax.random.PRNGKey(0)
    k1, k2, k3, k4, k5, k6 = jax.random.split(key, 6)

    # --- Test 1: tile-aligned shapes, full (M, N) bias (tiled Pallas path) ---
    M, K, N = 256, 512, 256
    inp = jax.random.normal(k1, (M, N), dtype=jnp.float32)
    m1 = jax.random.normal(k2, (M, K), dtype=jnp.float32)
    m2 = jax.random.normal(k3, (K, N), dtype=jnp.float32)

    out = jax.block_until_ready(addmm(inp, m1, m2))
    ref = BETA * inp + ALPHA * jnp.dot(m1, m2, preferred_element_type=jnp.float32)
    assert out.shape == (M, N)
    assert jnp.allclose(out, ref, rtol=2e-2, atol=5e-1), \
        float(jnp.max(jnp.abs(out - ref)))

    # --- Test 2: ragged shapes + row-broadcast (1, N) bias (padding path) ---
    M2, K2n, N2 = 200, 384, 192
    inp2 = jax.random.normal(k4, (1, N2), dtype=jnp.float32)
    a2 = jax.random.normal(k5, (M2, K2n), dtype=jnp.float32)
    b2 = jax.random.normal(k6, (K2n, N2), dtype=jnp.float32)

    out2 = jax.block_until_ready(addmm(inp2, a2, b2))
    ref2 = BETA * inp2 + ALPHA * jnp.dot(a2, b2, preferred_element_type=jnp.float32)
    assert out2.shape == (M2, N2)
    assert jnp.allclose(out2, ref2, rtol=2e-2, atol=5e-1), \
        float(jnp.max(jnp.abs(out2 - ref2)))

    print("KERNEL_OK")
</pallas_src>

<mosaic_0001>
module attributes {stable_mosaic.version = 11 : i64} {
  func.func @_addmm_kernel(%arg0: i32, %arg1: i32, %arg2: i32, %arg3: memref<128x128xf32, #tpu.memory_space<vmem>>, %arg4: memref<128x256xf32, #tpu.memory_space<vmem>>, %arg5: memref<256x128xf32, #tpu.memory_space<vmem>>, %arg6: memref<128x128xf32, #tpu.memory_space<vmem>>, %arg7: memref<128x128xf32, #tpu.memory_space<vmem>>) attributes {dimension_semantics = [#tpu.dimension_semantics<parallel>, #tpu.dimension_semantics<parallel>, #tpu.dimension_semantics<arbitrary>], iteration_bounds = array<i64: 2, 2, 2>, scalar_prefetch = 0 : i64, scratch_operands = 1 : i64, tpu.core_type = #tpu.core_type<tc>, window_params = [{transform_indices = @transform_0, window_bounds = array<i64: 128, 128>}, {transform_indices = @transform_1, window_bounds = array<i64: 128, 256>}, {transform_indices = @transform_2, window_bounds = array<i64: 256, 128>}, {transform_indices = @transform_3, window_bounds = array<i64: 128, 128>}]} {
    %c0_i32 = arith.constant 0 : i32
    %0 = arith.cmpi eq, %arg2, %c0_i32 : i32
    %1 = arith.extui %0 : i1 to i32
    %c0_i32_0 = arith.constant 0 : i32
    %2 = arith.cmpi ne, %1, %c0_i32_0 : i32
    scf.if %2 {
      %cst_9 = arith.constant 0.000000e+00 : f32
      %12 = vector.broadcast %cst_9 : f32 to vector<128x128xf32>
      %c0_10 = arith.constant 0 : index
      %c0_11 = arith.constant 0 : index
      %13 = vector.load %arg7[%c0_10, %c0_11] : memref<128x128xf32, #tpu.memory_space<vmem>>, vector<128x128xf32>
      tpu.vector_store %arg7[%c0_10, %c0_11], %12 {strides = array<i32>} : memref<128x128xf32, #tpu.memory_space<vmem>>, vector<128x128xf32>,
    } else {
    }
    %c0 = arith.constant 0 : index
    %c0_1 = arith.constant 0 : index
    %3 = vector.load %arg7[%c0, %c0_1] : memref<128x128xf32, #tpu.memory_space<vmem>>, vector<128x128xf32>
    %c0_2 = arith.constant 0 : index
    %c0_3 = arith.constant 0 : index
    %4 = vector.load %arg4[%c0_2, %c0_3] : memref<128x256xf32, #tpu.memory_space<vmem>>, vector<128x256xf32>
    %c0_4 = arith.constant 0 : index
    %c0_5 = arith.constant 0 : index
    %5 = vector.load %arg5[%c0_4, %c0_5] : memref<256x128xf32, #tpu.memory_space<vmem>>, vector<256x128xf32>
    %cst = arith.constant dense<0.000000e+00> : vector<128x128xf32>
    %6 = tpu.matmul %4, %5, %cst {dimension_numbers = #tpu.dot_dimension_numbers<[1], [0], [0], [1], [0, 0, 1, 1], [], []>} : vector<128x256xf32>, vector<256x128xf32>, vector<128x128xf32> -> vector<128x128xf32>
    %7 = arith.addf %3, %6 : vector<128x128xf32>
    %c0_6 = arith.constant 0 : index
    %c0_7 = arith.constant 0 : index
    %8 = vector.load %arg7[%c0_6, %c0_7] : memref<128x128xf32, #tpu.memory_space<vmem>>, vector<128x128xf32>
    tpu.vector_store %arg7[%c0_6, %c0_7], %7 {strides = array<i32>} : memref<128x128xf32, #tpu.memory_space<vmem>>, vector<128x128xf32>,
    %c1_i32 = arith.constant 1 : i32
    %9 = arith.cmpi eq, %arg2, %c1_i32 : i32
    %10 = arith.extui %9 : i1 to i32
    %c0_i32_8 = arith.constant 0 : i32
    %11 = arith.cmpi ne, %10, %c0_i32_8 : i32
    scf.if %11 {
      %c0_9 = arith.constant 0 : index
      %c0_10 = arith.constant 0 : index
      %12 = vector.load %arg3[%c0_9, %c0_10] : memref<128x128xf32, #tpu.memory_space<vmem>>, vector<128x128xf32>
      %cst_11 = arith.constant 3.000000e+00 : f32
      %13 = vector.broadcast %cst_11 : f32 to vector<128x128xf32>
      %14 = arith.mulf %13, %12 : vector<128x128xf32>
      %c0_12 = arith.constant 0 : index
      %c0_13 = arith.constant 0 : index
      %15 = vector.load %arg7[%c0_12, %c0_13] : memref<128x128xf32, #tpu.memory_space<vmem>>, vector<128x128xf32>
      %cst_14 = arith.constant 2.000000e+00 : f32
      %16 = vector.broadcast %cst_14 : f32 to vector<128x128xf32>
      %17 = arith.mulf %16, %15 : vector<128x128xf32>
      %18 = arith.addf %14, %17 : vector<128x128xf32>
      %c0_15 = arith.constant 0 : index
      %c0_16 = arith.constant 0 : index
      %19 = vector.load %arg6[%c0_15, %c0_16] : memref<128x128xf32, #tpu.memory_space<vmem>>, vector<128x128xf32>
      tpu.vector_store %arg6[%c0_15, %c0_16], %18 {strides = array<i32>} : memref<128x128xf32, #tpu.memory_space<vmem>>, vector<128x128xf32>,
    } else {
    }
    return
  }
  func.func @transform_0(%arg0: i32, %arg1: i32, %arg2: i32) -> (i32, i32) {
    %c0_i32 = arith.constant 0 : i32
    return %arg0, %arg1 : i32, i32
  }
  func.func @transform_1(%arg0: i32, %arg1: i32, %arg2: i32) -> (i32, i32) {
    %c0_i32 = arith.constant 0 : i32
    return %arg0, %arg2 : i32, i32
  }
  func.func @transform_2(%arg0: i32, %arg1: i32, %arg2: i32) -> (i32, i32) {
    %c0_i32 = arith.constant 0 : i32
    return %arg2, %arg1 : i32, i32
  }
  func.func @transform_3(%arg0: i32, %arg1: i32, %arg2: i32) -> (i32, i32) {
    %c0_i32 = arith.constant 0 : i32
    return %arg0, %arg1 : i32, i32
  }
}

</mosaic_0001>

<bundles_post_ra>
// kernel: tpu_custom_call.1
= control target key start
LH: loop header
LB: loop body
LE: loop exit
PB: predicated region body
PF: predicated region fallthrough
CT: control target
= control target key end

     0   :  { %s1790_s0 = inlined_call_operand.hbm [shape: f32[256,256], index: 0, kind: input, shape index: {}]   ;;  %s1791_s1 = inlined_call_operand.hbm [shape: f32[256,512], index: 1, kind: input, shape index: {}]   ;;  %s1792_s2 = inlined_call_operand.hbm [shape: f32[512,256], index: 2, kind: input, shape index: {}]   ;;  %s1793_s3 = inlined_call_operand.hbm [shape: f32[256,256], index: 3, kind: output, shape index: {}]  }
   0x1   :  { %1812 = sst [smem:[#allocation27_spill]] %s1790_s0 }
   0x2   :  { %1813 = sst [smem:[#allocation28_spill]] %s1791_s1 }
   0x3   :  { %1814 = sst [smem:[#allocation29_spill]] %s1792_s2 }
   0x4   :  { %1815 = sst [smem:[#allocation30_spill]] %s1793_s3 }
   0x5   :  { %8 = vsyncpa [#allocation4], 0 }
   0x6   :  { %10 = vsyncpa [#allocation4 + $0x1], 0 }
   0x7   :  { %11 = vsyncpa [#allocation7], 0 }
   0x8   :  { %13 = vsyncpa [#allocation7 + $0x1], 0 }
   0x9   :  { %14 = vsyncpa [#allocation5], 0 }
   0xa   :  { %16 = vsyncpa [#allocation5 + $0x1], 0  ;;  %s1351_s12 = smov 0   ;;  %s1353_s13 = smov 0  }
   0xb   :  { %s1355_s14 = smov 0   ;;  %s1357_s15 = smov 0  }
   0xc   :  { %s1359_s16 = smov 0   ;;  %s1361_s17 = smov 0  }
   0xd   :  { %s1363_s18 = smov 0   ;;  %s1365_s19 = smov 0  }
   0xe   :  { %s1367_s20 = smov 0   ;;  %s1369_s21 = smov 0  }
   0xf   :  { %s1371_s22 = smov 0   ;;  %s1373_s23 = smov 0  }
  0x10   :  { %s1375_s24 = smov 0   ;;  %s1377_s25 = smov 0  }
  0x11   :  { %s1379_s26 = smov 0   ;;  %s1381_s27 = smov 0  }
  0x12 LB: > { %1816 = sst [smem:[#allocation14_spill]] %s1276_s16  ;;  %s1430_s28 = sadd.s32 4294967295, %s1320_s27   ;;  %s1320_s27 = sphi %s1381_s27, %s22_s27   ;;  %s1316_s26 = sphi %s1379_s26, %s1881_s26   ;;  %s1312_s25 = sphi %s1377_s25, %s1880_s25   ;;  %s1308_s24 = sphi %s1375_s24, %s1879_s24   ;;  %s1304_s23 = sphi %s1373_s23, %s1878_s23   ;;  %s1300_s22 = sphi %s1371_s22, %s1877_s22   ;;  %s1296_s21 = sphi %s1369_s21, %s1876_s21   ;;  %s1292_s20 = sphi %s1367_s20, %s1875_s20   ;;  %s1288_s19 = sphi %s1365_s19, %s1874_s19   ;;  %s1284_s18 = sphi %s1363_s18, %s1873_s18   ;;  %s1280_s17 = sphi %s1361_s17, %s1872_s17   ;;  %s1276_s16 = sphi %s1359_s16, %s1871_s16   ;;  %s1272_s15 = sphi %s1357_s15, %s1861_s15   ;;  %s1268_s14 = sphi %s1355_s14, %s1870_s14   ;;  %s1264_s13 = sphi %s1353_s13, %s1869_s13   ;;  %s1260_s12 = sphi %s1351_s12, %s1867_s12  }
  0x13   : > { %1817 = sst [smem:[#allocation15_spill]] %s1296_s21  ;;  %s34_s29 = sadd.s32 1, %s1308_s24 }
  0x14   : > { %1818 = sst [smem:[#allocation16_spill]] %s1300_s22  ;;  %p1433_p0 = scmp.ge.s32.totalorder %s34_s29, 2 }
  0x15   : > { %1819 = sst [smem:[#allocation17_spill]] %s1304_s23  ;;  %p1802_p1 = scmp.eq.s32.totalorder %s1320_s27, 0 }
  0x16   : > { %1820 = sst [smem:[#allocation18_spill]] %s1316_s26  ;;  %p1801_p2 = scmp.eq.s32.totalorder %s1430_s28, 0 }
  0x17   : > { %s1883_s29 = smov (%p1433_p0, %s34_s29), 0  ;;  %p85_p3 = scmp.ne.s32.totalorder %s1280_s17, %s1276_s16 }
  0x18   : > { %1822 = sst [smem:[#allocation19_spill]] %s1883_s29  ;;  %s1449_s6 = ssub.s32 %s1308_s24, %s1883_s29 }
  0x19   : > { %p91_p4 = scmp.ne.s32.totalorder %s1276_s16, %s1272_s15  ;;  %p1454_p5 = por %p85_p3, %p1802_p1 }
  0x1a   : > { %p1803_p7 = scmp.lt.s32.totalorder %s1320_s27, 8  ;;  %s195_s9 = sand.u32 1, %s1320_s27  }
  0x1b   : > { %p1460_p6 = por %p91_p4, %p1801_p2  ;;  %s197_s10 = sand.u32 1, %s1280_s17  }
  0x1c   : > { %s841_s11 = sshll.u32 %s197_s10, 8  ;;  %s843_s5 = sshll.u32 %s1308_s24, 1 }
  0x1d   : > { %s1824_s8 = scalar_select %p1460_p6, 1, 0 }
  0x1e   : > { %s864_s4 = sshll.u32 %s1316_s26, 6  ;;  %s199_s29 = scalar_lea.vmem [#allocation6], %s841_s11 }
  0x1f   : > { %1825 = sst [smem:[#allocation20_spill]] %s1824_s8  ;;  %s205_s15 = sadd.s32 %s864_s4, %s843_s5 }
  0x20   : > { %s210_s3 = sshll.u32 %s199_s29, 4  ;;  %s845_s22 = sshll.u32 %s205_s15, 3  ;;  %s211_s3 = int_to_ptr.vmem [resolvable:$true] %s210_s3 }
  0x21   : > { %s1826_s1 = sld [smem:[#allocation28_spill]]  ;;  %p911_p8 = pnand %p1803_p7, %p1454_p5 }
  0x22   : > { %p850_p9 = scmp.ge.s32.totalorder %s1320_s27, 1  ;;  %s1477_s29 = scalar_lea.sflag [#allocation7], %s195_s9 }
  0x23   : > { %s1322_s4 = smov 512   ;;  %s1798_s21 = smov 256  }
  0x24   : > { %p242_p10 = scmp.lt.s32.totalorder %s1320_s27, 9  ;;  %s834_s5 = sadd.s32 4294967294, %s1320_s27  }
  0x25   : > { %s37_s7 = sadd.s32 1, %s1312_s25  ;;  %p57_p12 = scmp.ne.s32.totalorder %s1292_s20, %s1288_s19 }
  0x26   : > { %p1482_p11 = pnand %p850_p9, %p242_p10  ;;  %s1885_s7 = smov (!%p1433_p0, %s37_s7), %s1312_s25 }
  0x27   : > { %s207_s8 = scalar_lea.hbm %s1826_s1, %s845_s22  ;;  %s1324_s22 = smov 16  }
  0x28   : > { %s208_s10 = sshll.u32 %s207_s8, 4  ;;  %s50_s8 = sadd.s32 1, %s1292_s20  ;;  %s209_s10 = int_to_ptr.hbm [resolvable:$true] %s208_s10 }
  0x29   : > { %913 = dma.hbm_to_vmem [thread:$0]  (!%p911_p8), %s209_s10, 4096, %s211_s3, %s1477_s29, %s1322_s4, %s1798_s21, %s1324_s22  }
  0x2a   : > { %s1827_s23 = scalar_select %p1482_p11, 1, 0 }
  0x2b   : > { %p39_p13 = scmp.ge.s32.totalorder %s1885_s7, 2  ;;  %p63_p3 = scmp.ne.s32.totalorder %s1288_s19, %s1284_s18 }
  0x2c   : > { %1828 = sst [smem:[#allocation21_spill]] %s1827_s23  ;;  %p1498_p4 = por %p1802_p1, %p57_p12 }
  0x2d   : > { %p145_p5 = scmp.eq.s32.totalorder %s1430_s28, 7  ;;  %s1887_s7 = smov (%p39_p13, %s1885_s7), 0 }
  0x2e   : > { %1830 = sst [smem:[#allocation22_spill]] %s1887_s7  ;;  %s1831_s9 = sadd.s32 1, %s1316_s26 }
  0x2f   : > { %s1889_s9 = smov (!%p39_p13, %s1831_s9), %s1316_s26  ;;  %s46_s30 = ssub.s32 %s1312_s25, %s1887_s7 }
  0x30   : > { %p1515_p0 = por %p1801_p2, %p63_p3  ;;  %p43_p8 = scmp.ge.s32.totalorder %s1889_s9, 2 }
  0x31   : > { %s103_s15 = sor.u32 %s1449_s6, %s46_s30  ;;  %p1524_p10 = por %p145_p5, %p57_p12 }
  0x32   : > { %s1832_s11 = scalar_select %p1515_p0, 1, 0 }
  0x33   : > { %p1520_p9 = scmp.eq.s32.totalorder %s103_s15, 0  ;;  %s1891_s9 = smov (%p43_p8, %s1889_s9), 0 }
  0x34   : > { %1833 = sst [smem:[#allocation23_spill]] %s1832_s11  ;;  %p151_p13 = scmp.eq.s32.totalorder %s834_s5, 7 }
  0x35   : > { %s1835_s4 = scalar_select %p1524_p10, 1, 0 }
  0x36   : > { %1837 = sst [smem:[#allocation25_spill]] %s1891_s9  ;;  %s171_s22 = sand.u32 1, %s1292_s20  }
  0x37   : > { %1836 = sst [smem:[#allocation24_spill]] %s1835_s4  ;;  %s45_s21 = ssub.s32 %s1316_s26, %s1891_s9 }
  0x38   : > { %s47_s1 = sor.u32 %s46_s30, %s45_s21  ;;  %s75_s7 = sor.u32 %s1449_s6, %s45_s21 }
  0x39   : > { %p48_p2 = scmp.eq.s32.totalorder %s47_s1, 0  ;;  %p76_p1 = scmp.eq.s32.totalorder %s75_s7, 0 }
  0x3a   : > { %p1537_p7 = por %p151_p13, %p63_p3  ;;  %s837_s16 = sshll.u32 %s171_s22, 7 }
  0x3b   : > { %s1542_s11 = scalar_select %p48_p2, %s1292_s20, %s50_s8  }
  0x3c   : > { %s1840_s4 = sadd.s32 1, %s1280_s17  ;;  %s863_s5 = sshll.u32 %s1316_s26, 5 }
  0x3d   : > { %1839 = sst [smem:[#allocation26_spill]] %s1542_s11  ;;  %s180_s6 = sadd.s32 %s1312_s25, %s863_s5 }
  0x3e   : > { %s1547_s23 = scalar_select %p76_p1, %s1280_s17, %s1840_s4  }
  0x3f   : > { %s175_s1 = scalar_lea.vmem [#allocation3], %s837_s16  ;;  %s840_s7 = sshll.u32 %s180_s6, 3 }
  0x40   : > { %s185_s21 = sshll.u32 %s175_s1, 4  ;;  %s1841_s0 = sld [smem:[#allocation27_spill]]  ;;  %s186_s21 = int_to_ptr.vmem [resolvable:$true] %s185_s21 }
  0x41   : > { %p1842_p1 = scmp.lt.s32.totalorder %s1320_s27, 8  ;;  %s172_s5 = scalar_lea.sflag [#allocation4], %s171_s22 }
  0x42   : > { %s1325_s26 = smov 128   ;;  %s1326_s16 = smov 8  }
  0x43   : > { %p908_p2 = pnand %p1842_p1, %p1498_p4  ;;  %s1843_s11 = smov 256  }
  0x44   : > { %s106_s1 = sadd.s32 1, %s1268_s14  ;;  %p113_p12 = scmp.ne.s32.totalorder %s1268_s14, %s1264_s13 }
  0x45   : > { %s1563_s6 = scalar_select %p1520_p9, %s1268_s14, %s106_s1  }
  0x46   : > { %s182_s4 = scalar_lea.hbm %s1841_s0, %s840_s7  ;;  %p119_p3 = scmp.ne.s32.totalorder %s1264_s13, %s1260_s12 }
  0x47   : > { %s183_s9 = sshll.u32 %s182_s4, 4  ;;  %s222_s7 = sand.u32 1, %s1268_s14   ;;  %s184_s9 = int_to_ptr.hbm [resolvable:$true] %s183_s9 }
  0x48   : > { %910 = dma.hbm_to_vmem [thread:$0]  (!%p908_p2), %s184_s9, 2048, %s186_s21, %s172_s5, %s1843_s11, %s1325_s26, %s1326_s16  }
  0x49   : > { %s865_s3 = sshll.u32 %s1308_s24, 6  ;;  %p1844_p5 = scmp.eq.s32.totalorder %s1320_s27, 0 }
  0x4a   : > { %p1845_p8 = scmp.eq.s32.totalorder %s1430_s28, 0  ;;  %s846_s22 = sshll.u32 %s222_s7, 8 }
  0x4b   : > { %p115_p4 = por %p113_p12, %p1844_p5  ;;  %s229_s30 = sadd.s32 %s1312_s25, %s865_s3 }
  0x4c   : > { %p1575_p13 = por %p119_p3, %p1845_p8  ;;  %s849_s9 = sshll.u32 %s229_s30, 3 }
  0x4d   : > { %s1847_s2 = sld [smem:[#allocation29_spill]]  ;;  %s224_s5 = scalar_lea.vmem [#allocation8], %s846_s22 }
  0x4e   : > { %s234_s1 = sshll.u32 %s224_s5, 4  ;;  %p1848_p9 = pmov %p1842_p1  ;;  %s235_s1 = int_to_ptr.vmem [resolvable:$true] %s234_s1 }
  0x4f   : > { %s1590_s3 = sand.u32 (!%p1482_p11), 1, %s1288_s19  }
  0x50   : > { %p914_p1 = pnand %p1848_p9, %p115_p4  ;;  %s851_s30 = sshll.u32 (!%p1482_p11), %s1590_s3, 7 }
  0x51   : > { %246 = sbr.rel (%p1482_p11) target bundleno = 403 (0x193), region = 32  ;;  %s1594_s22 = scalar_lea.vmem (!%p1482_p11), [#allocation3], %s851_s30 }
  0x53   : > { %s231_s4 = scalar_lea.hbm %s1847_s2, %s849_s9  ;;  %s249_s9 = scalar_lea.sflag (!%p1482_p11), [#allocation4], %s1590_s3 }
  0x54   : > { %s232_s0 = sshll.u32 %s231_s4, 4  ;;  %s233_s0 = int_to_ptr.hbm [resolvable:$true] %s232_s0 }
  0x55   : > { %916 = dma.hbm_to_vmem [thread:$0]  (!%p914_p1), %s233_s0, 4096, %s235_s1, %s1477_s29, %s1843_s11, %s1325_s26, %s1326_s16  }
  0x56   : > { %1243 = dma.done.wait (%p1515_p0), %s249_s9, 2048  }
  0x57   : > { %1245 = vsyncadd (%p1515_p0), %s249_s9, 4294965248  ;;  %s1851_s0 = sld [smem:[#allocation14_spill]]  ;;  %s258_s29 = sand.u32 1, %s1430_s28  }
  0x58   : > { %s259_s21 = scalar_lea.sflag [#allocation7], %s258_s29 }
  0x5d   : > { %s260_s11 = sand.u32 1, %s1851_s0  }
  0x5e   : > { %s852_s16 = sshll.u32 %s260_s11, 8 }
  0x5f   : > { %s1602_s10 = scalar_lea.vmem [#allocation6], %s852_s16 }
  0x60   : > { %1247 = dma.done.wait (%p1460_p6), %s259_s21, 4096  }
  0x61   : > { %1249 = vsyncadd (%p1460_p6), %s259_s21, 4294963200  ;;  %s270_s4 = sand.u32 1, %s1264_s13  }
  0x62   : > { %s853_s5 = sshll.u32 %s270_s4, 8 }
  0x63   : > { %s1609_s1 = scalar_lea.vmem [#allocation8], %s853_s5 }
  0x64   : > { %1251 = dma.done.wait (%p1575_p13), %s259_s21, 4096  }
  0x65   : > { %1253 = vsyncadd (%p1575_p13), %s259_s21, 4294963200  ;;  %s1615_s28 = scalar_lea.vmem [#allocation9], %s851_s30  ;;  %s1853_s12 = sld [smem:[#allocation15_spill]] }
  0x6b   : > { %p855_p11 = scmp.ne.s32.totalorder %s1853_s12, 0 }
  0x6d   : > { %314 = sbr.rel (%p855_p11) target bundleno = 131 (0x83), region = 48 }
  0x72   : > { %v1327_v0 = vmov 0.0  }
  0x73   : > { %315 = vst [vmem:[#allocation2 + $0x30] sm:$0xff] %v1327_v0 }
  0x74   : > { %316 = vst [vmem:[#allocation2] sm:$0xff] %v1327_v0 }
  0x75   : > { %317 = vst [vmem:[#allocation2 + $0x58] sm:$0xff] %v1327_v0 }
  0x76   : > { %318 = vst [vmem:[#allocation2 + $0x18] sm:$0xff] %v1327_v0 }
  0x77   : > { %319 = vst [vmem:[#allocation2 + $0x50] sm:$0xff] %v1327_v0 }
  0x78   : > { %320 = vst [vmem:[#allocation2 + $0x68] sm:$0xff] %v1327_v0 }
  0x79   : > { %321 = vst [vmem:[#allocation2 + $0x8] sm:$0xff] %v1327_v0 }
  0x7a   : > { %322 = vst [vmem:[#allocation2 + $0x48] sm:$0xff] %v1327_v0 }
  0x7b   : > { %323 = vst [vmem:[#allocation2 + $0x40] sm:$0xff] %v1327_v0 }
  0x7c   : > { %324 = vst [vmem:[#allocation2 + $0x20] sm:$0xff] %v1327_v0 }
  0x7d   : > { %325 = vst [vmem:[#allocation2 + $0x10] sm:$0xff] %v1327_v0 }
  0x7e   : > { %326 = vst [vmem:[#allocation2 + $0x38] sm:$0xff] %v1327_v0 }
  0x7f   : > { %327 = vst [vmem:[#allocation2 + $0x60] sm:$0xff] %v1327_v0 }
  0x80   : > { %328 = vst [vmem:[#allocation2 + $0x70] sm:$0xff] %v1327_v0 }
  0x81   : > { %329 = vst [vmem:[#allocation2 + $0x78] sm:$0xff] %v1327_v0 }
  0x82   : > { %330 = vst [vmem:[#allocation2 + $0x28] sm:$0xff] %v1327_v0 }
  0x83 PF: > { %v394_v1 = vld [vmem:[%s1609_s1 + $0x78] sm:$0xff]  ;;  %v393_v3 = vld [vmem:[%s1609_s1 + $0x70] sm:$0xff]  ;;  %v392_v5 = vld [vmem:[%s1609_s1 + $0x68] sm:$0xff]  ;;  %s1854_s8 = sld [smem:[#allocation15_spill]] }
  0x84   : > { %v410_v2 = vld [vmem:[%s1609_s1 + $0xf8] sm:$0xff]  ;;  %867 = vmatpush.msra.mxu2 %v394_v1  ;;  %v409_v4 = vld [vmem:[%s1609_s1 + $0xf0] sm:$0xff]  ;;  %v408_v6 = vld [vmem:[%s1609_s1 + $0xe8] sm:$0xff]  ;;  %411 = vmatpush.msra.mxu0 %v394_v1 }
  0x85   : > { %883 = vmatpush.msra.mxu3 %v410_v2  ;;  %476 = vmatpush.msra.mxu1 %v410_v2  ;;  %v391_v7 = vld [vmem:[%s1609_s1 + $0x60] sm:$0xff]  ;;  %v390_v9 = vld [vmem:[%s1609_s1 + $0x58] sm:$0xff]  ;;  %v389_v11 = vld [vmem:[%s1609_s1 + $0x50] sm:$0xff] }
  0x86   : > { %868 = vmatpush.msra.mxu2 %v393_v3  ;;  %v407_v8 = vld [vmem:[%s1609_s1 + $0xe0] sm:$0xff]  ;;  %412 = vmatpush.msra.mxu0 %v393_v3  ;;  %v406_v10 = vld [vmem:[%s1609_s1 + $0xd8] sm:$0xff]  ;;  %v405_v12 = vld [vmem:[%s1609_s1 + $0xd0] sm:$0xff] }
  0x87   : > { %884 = vmatpush.msra.mxu3 %v409_v4  ;;  %477 = vmatpush.msra.mxu1 %v409_v4  ;;  %v388_v13 = vld [vmem:[%s1609_s1 + $0x48] sm:$0xff]  ;;  %v387_v15 = vld [vmem:[%s1609_s1 + $0x40] sm:$0xff]  ;;  %v386_v17 = vld [vmem:[%s1609_s1 + $0x38] sm:$0xff] }
  0x88   : > { %869 = vmatpush.msra.mxu2 %v392_v5  ;;  %413 = vmatpush.msra.mxu0 %v392_v5  ;;  %v404_v14 = vld [vmem:[%s1609_s1 + $0xc8] sm:$0xff]  ;;  %v403_v16 = vld [vmem:[%s1609_s1 + $0xc0] sm:$0xff]  ;;  %v402_v18 = vld [vmem:[%s1609_s1 + $0xb8] sm:$0xff] }
  0x89   : > { %885 = vmatpush.msra.mxu3 %v408_v6  ;;  %478 = vmatpush.msra.mxu1 %v408_v6  ;;  %v385_v19 = vld [vmem:[%s1609_s1 + $0x30] sm:$0xff]  ;;  %v384_v21 = vld [vmem:[%s1609_s1 + $0x28] sm:$0xff]  ;;  %v383_v23 = vld [vmem:[%s1609_s1 + $0x20] sm:$0xff]  ;;  %p856_p6 = scmp.ne.s32.totalorder %s1854_s8, 1 }
  0x8a   : > { %870 = vmatpush.msra.mxu2 %v391_v7  ;;  %414 = vmatpush.msra.mxu0 %v391_v7  ;;  %v401_v20 = vld [vmem:[%s1609_s1 + $0xb0] sm:$0xff]  ;;  %v400_v22 = vld [vmem:[%s1609_s1 + $0xa8] sm:$0xff]  ;;  %v399_v24 = vld [vmem:[%s1609_s1 + $0xa0] sm:$0xff] }
  0x8b   : > { %886 = vmatpush.msra.mxu3 %v407_v8  ;;  %479 = vmatpush.msra.mxu1 %v407_v8  ;;  %v382_v25 = vld [vmem:[%s1609_s1 + $0x18] sm:$0xff]  ;;  %v381_v27 = vld [vmem:[%s1609_s1 + $0x10] sm:$0xff]  ;;  %v380_v29 = vld [vmem:[%s1609_s1 + $0x8] sm:$0xff] }
  0x8c   : > { %871 = vmatpush.msra.mxu2 %v390_v9  ;;  %415 = vmatpush.msra.mxu0 %v390_v9  ;;  %v398_v26 = vld [vmem:[%s1609_s1 + $0x98] sm:$0xff]  ;;  %v397_v28 = vld [vmem:[%s1609_s1 + $0x90] sm:$0xff]  ;;  %v396_v30 = vld [vmem:[%s1609_s1 + $0x88] sm:$0xff] }
  0x8d   : > { %887 = vmatpush.msra.mxu3 %v406_v10  ;;  %480 = vmatpush.msra.mxu1 %v406_v10  ;;  %v379_v31 = vld [vmem:[%s1609_s1] sm:$0xff]  ;;  %v364_v34 = vld [vmem:[%s1602_s10 + $0x88] sm:$0xff]  ;;  %v365_v37 = vld [vmem:[%s1602_s10 + $0x90] sm:$0xff] }
  0x8e   : > { %872 = vmatpush.msra.mxu2 %v389_v11  ;;  %416 = vmatpush.msra.mxu0 %v389_v11  ;;  %v395_v32 = vld [vmem:[%s1609_s1 + $0x80] sm:$0xff]  ;;  %v348_v36 = vld [vmem:[%s1602_s10 + $0x8] sm:$0xff]  ;;  %v366_v38 = vld [vmem:[%s1602_s10 + $0x98] sm:$0xff] }
  0x8f   : > { %888 = vmatpush.msra.mxu3 %v405_v12  ;;  %481 = vmatpush.msra.mxu1 %v405_v12  ;;  %v363_v33 = vld [vmem:[%s1602_s10 + $0x80] sm:$0xff]  ;;  %v349_v39 = vld [vmem:[%s1602_s10 + $0x10] sm:$0xff]  ;;  %v350_v40 = vld [vmem:[%s1602_s10 + $0x18] sm:$0xff] }
  0x90   : > { %873 = vmatpush.msra.mxu2 %v388_v13  ;;  %417 = vmatpush.msra.mxu0 %v388_v13  ;;  %v347_v35 = vld [vmem:[%s1602_s10] sm:$0xff]  ;;  %v368_v42 = vld [vmem:[%s1602_s10 + $0xa8] sm:$0xff]  ;;  %v369_v45 = vld [vmem:[%s1602_s10 + $0xb0] sm:$0xff] }
  0x91   : > { %889 = vmatpush.msra.mxu3 %v404_v14  ;;  %482 = vmatpush.msra.mxu1 %v404_v14  ;;  %v367_v41 = vld [vmem:[%s1602_s10 + $0xa0] sm:$0xff]  ;;  %v352_v44 = vld [vmem:[%s1602_s10 + $0x28] sm:$0xff]  ;;  %v370_v46 = vld [vmem:[%s1602_s10 + $0xb8] sm:$0xff] }
  0x92   : > { %874 = vmatpush.msra.mxu2 %v387_v15  ;;  %418 = vmatpush.msra.mxu0 %v387_v15  ;;  %v351_v43 = vld [vmem:[%s1602_s10 + $0x20] sm:$0xff]  ;;  %v353_v47 = vld [vmem:[%s1602_s10 + $0x30] sm:$0xff]  ;;  %v354_v48 = vld [vmem:[%s1602_s10 + $0x38] sm:$0xff] }
  0x93   : > { %890 = vmatpush.msra.mxu3 %v403_v16  ;;  %483 = vmatpush.msra.mxu1 %v403_v16  ;;  %v371_v49 = vld [vmem:[%s1602_s10 + $0xc0] sm:$0xff]  ;;  %v372_v50 = vld [vmem:[%s1602_s10 + $0xc8] sm:$0xff]  ;;  %v373_v53 = vld [vmem:[%s1602_s10 + $0xd0] sm:$0xff] }
  0x94   : > { %875 = vmatpush.msra.mxu2 %v386_v17  ;;  %419 = vmatpush.msra.mxu0 %v386_v17  ;;  %v355_v51 = vld [vmem:[%s1602_s10 + $0x40] sm:$0xff]  ;;  %v356_v52 = vld [vmem:[%s1602_s10 + $0x48] sm:$0xff]  ;;  %v374_v54 = vld [vmem:[%s1602_s10 + $0xd8] sm:$0xff] }
  0x95   : > { %891 = vmatpush.msra.mxu3 %v402_v18  ;;  %484 = vmatpush.msra.mxu1 %v402_v18  ;;  %v357_v55 = vld [vmem:[%s1602_s10 + $0x50] sm:$0xff]  ;;  %v358_v56 = vld [vmem:[%s1602_s10 + $0x58] sm:$0xff]  ;;  %v375_v57 = vld [vmem:[%s1602_s10 + $0xe0] sm:$0xff] }
  0x96   : > { %876 = vmatpush.msra.mxu2 %v385_v19  ;;  %420 = vmatpush.msra.mxu0 %v385_v19  ;;  %v376_v58 = vld [vmem:[%s1602_s10 + $0xe8] sm:$0xff]  ;;  %v359_v59 = vld [vmem:[%s1602_s10 + $0x60] sm:$0xff]  ;;  %v377_v61 = vld [vmem:[%s1602_s10 + $0xf0] sm:$0xff] }
  0x97   : > { %892 = vmatpush.msra.mxu3 %v401_v20  ;;  %485 = vmatpush.msra.mxu1 %v401_v20  ;;  %v360_v60 = vld [vmem:[%s1602_s10 + $0x68] sm:$0xff]  ;;  %v378_v62 = vld [vmem:[%s1602_s10 + $0xf8] sm:$0xff]  ;;  %v361_v63 = vld [vmem:[%s1602_s10 + $0x70] sm:$0xff] }
  0x98   : > { %877 = vmatpush.msra.mxu2 %v384_v21  ;;  %421 = vmatpush.msra.mxu0 %v384_v21  ;;  %v362_v0 = vld [vmem:[%s1602_s10 + $0x78] sm:$0xff]  ;;  %v331_v2 = vld [vmem:[#allocation2 + $0x30] sm:$0xff]  ;;  %v339_v7 = vld [vmem:[#allocation2 + $0x40] sm:$0xff] }
  0x99   : > { %893 = vmatpush.msra.mxu3 %v400_v22  ;;  %486 = vmatpush.msra.mxu1 %v400_v22  ;;  %v332_v12 = vld [vmem:[#allocation2] sm:$0xff]  ;;  %v333_v22 = vld [vmem:[#allocation2 + $0x58] sm:$0xff] }
  0x9a   : > { %878 = vmatpush.msra.mxu2 %v383_v23  ;;  %422 = vmatpush.msra.mxu0 %v383_v23  ;;  %v340_v17 = vld [vmem:[#allocation2 + $0x20] sm:$0xff] }
  0x9b   : > { %894 = vmatpush.msra.mxu3 %v399_v24  ;;  %487 = vmatpush.msra.mxu1 %v399_v24 }
  0x9c   : > { %879 = vmatpush.msra.mxu2 %v382_v25  ;;  %423 = vmatpush.msra.mxu0 %v382_v25 }
  0x9d   : > { %895 = vmatpush.msra.mxu3 %v398_v26  ;;  %488 = vmatpush.msra.mxu1 %v398_v26 }
  0x9e   : > { %880 = vmatpush.msra.mxu2 %v381_v27  ;;  %424 = vmatpush.msra.mxu0 %v381_v27  ;;  %v341_v27 = vld [vmem:[#allocation2 + $0x10] sm:$0xff] }
  0x9f   : > { %896 = vmatpush.msra.mxu3 %v397_v28  ;;  %489 = vmatpush.msra.mxu1 %v397_v28 }
  0xa0   : > { %881 = vmatpush.msra.mxu2 %v380_v29  ;;  %425 = vmatpush.msra.mxu0 %v380_v29 }
  0xa1   : > { %897 = vmatpush.msra.mxu3 %v396_v30  ;;  %490 = vmatpush.msra.mxu1 %v396_v30 }
  0xa2   : > { %882 = vmatpush.msra.mxu2 %v379_v31  ;;  %426 = vmatpush.msra.mxu0 %v379_v31 }
  0xa3   : > { %898 = vmatpush.msra.mxu3 %v395_v32  ;;  %451 = vmatmul.f32.vlgmr.msra.gmra.mxu2 %v363_v33 }
  0xa4   : > { %516 = vmatmul.f32.vlgmr.msra.gmra.mxu3 %v364_v34  ;;  %491 = vmatpush.msra.mxu1 %v395_v32  ;;  %v334_v32 = vld [vmem:[#allocation2 + $0x18] sm:$0xff] }
  0xa5   : > { %427 = vmatmul.f32.vlgmr.msra.gmra.mxu0 %v347_v35  ;;  %492 = vmatmul.f32.vlgmr.msra.gmra.mxu1 %v348_v36 }
  0xab   : > { %454 = vmatmul.f32.gmra.mxu2 %v365_v37  ;;  %v342_v37 = vld [vmem:[#allocation2 + $0x38] sm:$0xff] }
  0xac   : > { %519 = vmatmul.f32.gmra.mxu3 %v366_v38 }
  0xad   : > { %430 = vmatmul.f32.gmra.mxu0 %v349_v39  ;;  %495 = vmatmul.f32.gmra.mxu1 %v350_v40 }
  0xb3   : > { %457 = vmatmul.f32.gmra.mxu2 %v367_v41 }
  0xb4   : > { %522 = vmatmul.f32.gmra.mxu3 %v368_v42  ;;  %v335_v42 = vld [vmem:[#allocation2 + $0x50] sm:$0xff] }
  0xb5   : > { %433 = vmatmul.f32.gmra.mxu0 %v351_v43  ;;  %498 = vmatmul.f32.gmra.mxu1 %v352_v44 }
  0xbb   : > { %460 = vmatmul.f32.gmra.mxu2 %v369_v45 }
  0xbc   : > { %525 = vmatmul.f32.gmra.mxu3 %v370_v46 }
  0xbd   : > { %436 = vmatmul.f32.gmra.mxu0 %v353_v47  ;;  %501 = vmatmul.f32.gmra.mxu1 %v354_v48  ;;  %v343_v47 = vld [vmem:[#allocation2 + $0x60] sm:$0xff] }
  0xc3   : > { %463 = vmatmul.f32.gmra.mxu2 %v371_v49 }
  0xc4   : > { %528 = vmatmul.f32.gmra.mxu3 %v372_v50 }
  0xc5   : > { %439 = vmatmul.f32.gmra.mxu0 %v355_v51  ;;  %504 = vmatmul.f32.gmra.mxu1 %v356_v52  ;;  %v336_v52 = vld [vmem:[#allocation2 + $0x68] sm:$0xff] }
  0xcb   : > { %466 = vmatmul.f32.gmra.mxu2 %v373_v53 }
  0xcc   : > { %531 = vmatmul.f32.gmra.mxu3 %v374_v54 }
  0xcd   : > { %442 = vmatmul.f32.gmra.mxu0 %v357_v55  ;;  %507 = vmatmul.f32.gmra.mxu1 %v358_v56 }
  0xd3   : > { %469 = vmatmul.f32.gmra.mxu2 %v375_v57  ;;  %v344_v57 = vld [vmem:[#allocation2 + $0x70] sm:$0xff] }
  0xd4   : > { %534 = vmatmul.f32.gmra.mxu3 %v376_v58 }
  0xd5   : > { %445 = vmatmul.f32.gmra.mxu0 %v359_v59  ;;  %510 = vmatmul.f32.gmra.mxu1 %v360_v60 }
  0xdb   : > { %472 = vmatmul.f32.gmra.mxu2 %v377_v61 }
  0xdc   : > { %537 = vmatmul.f32.gmra.mxu3 %v378_v62  ;;  %v337_v62 = vld [vmem:[#allocation2 + $0x8] sm:$0xff] }
  0xdd   : > { %448 = vmatmul.f32.gmra.mxu0 %v361_v63  ;;  %513 = vmatmul.f32.gmra.mxu1 %v362_v0 }
 0x122   : > { %v428_v1 = vpop.f32.mrf.mxu0  ;;  %v493_v3 = vpop.f32.mrf.mxu1 }
 0x123   : > { %v494_v4 = vadd.f32 %v493_v3, %v428_v1  ;;  %v345_v3 = vld [vmem:[#allocation2 + $0x78] sm:$0xff] }
 0x125   : > { %v541_v5 = vadd.f32 %v494_v4, %v331_v2 }
 0x126   : > { %v452_v6 = vpop.f32.mrf.mxu2 }
 0x127   : > { %v517_v8 = vpop.f32.mrf.mxu3  ;;  %557 = vst [vmem:[#allocation2 + $0x30] sm:$0xff] %v541_v5 }
 0x128   : > { %v518_v9 = vadd.f32 %v517_v8, %v452_v6  ;;  %v338_v8 = vld [vmem:[#allocation2 + $0x48] sm:$0xff] }
 0x12a   : > { %v549_v10 = vadd.f32 %v518_v9, %v339_v7  ;;  %v431_v11 = vpop.f32.mrf.mxu0  ;;  %v496_v13 = vpop.f32.mrf.mxu1 }
 0x12b   : > { %v497_v14 = vadd.f32 %v496_v13, %v431_v11  ;;  %v346_v13 = vld [vmem:[#allocation2 + $0x28] sm:$0xff] }
 0x12c   : > { %565 = vst [vmem:[#allocation2 + $0x40] sm:$0xff] %v549_v10 }
 0x12d   : > { %v542_v15 = vadd.f32 %v497_v14, %v332_v12 }
 0x12e   : > { %v455_v16 = vpop.f32.mrf.mxu2 }
 0x12f   : > { %v520_v18 = vpop.f32.mrf.mxu3  ;;  %558 = vst [vmem:[#allocation2] sm:$0xff] %v542_v15 }
 0x130   : > { %v521_v19 = vadd.f32 %v520_v18, %v455_v16 }
 0x132   : > { %v550_v20 = vadd.f32 %v521_v19, %v340_v17  ;;  %v434_v21 = vpop.f32.mrf.mxu0  ;;  %v499_v23 = vpop.f32.mrf.mxu1 }
 0x133   : > { %v500_v24 = vadd.f32 %v499_v23, %v434_v21 }
 0x134   : > { %566 = vst [vmem:[#allocation2 + $0x20] sm:$0xff] %v550_v20 }
 0x135   : > { %v543_v25 = vadd.f32 %v500_v24, %v333_v22 }
 0x136   : > { %v458_v26 = vpop.f32.mrf.mxu2 }
 0x137   : > { %v523_v28 = vpop.f32.mrf.mxu3  ;;  %559 = vst [vmem:[#allocation2 + $0x58] sm:$0xff] %v543_v25 }
 0x138   : > { %v524_v29 = vadd.f32 %v523_v28, %v458_v26 }
 0x13a   : > { %v551_v30 = vadd.f32 %v524_v29, %v341_v27  ;;  %v437_v31 = vpop.f32.mrf.mxu0  ;;  %v502_v33 = vpop.f32.mrf.mxu1 }
 0x13b   : > { %v503_v34 = vadd.f32 %v502_v33, %v437_v31 }
 0x13c   : > { %567 = vst [vmem:[#allocation2 + $0x10] sm:$0xff] %v551_v30 }
 0x13d   : > { %v544_v35 = vadd.f32 %v503_v34, %v334_v32 }
 0x13e   : > { %v461_v36 = vpop.f32.mrf.mxu2 }
 0x13f   : > { %v526_v38 = vpop.f32.mrf.mxu3  ;;  %560 = vst [vmem:[#allocation2 + $0x18] sm:$0xff] %v544_v35 }
 0x140   : > { %v527_v39 = vadd.f32 %v526_v38, %v461_v36 }
 0x142   : > { %v552_v40 = vadd.f32 %v527_v39, %v342_v37  ;;  %v440_v41 = vpop.f32.mrf.mxu0  ;;  %v505_v43 = vpop.f32.mrf.mxu1 }
 0x143   : > { %v506_v44 = vadd.f32 %v505_v43, %v440_v41 }
 0x144   : > { %568 = vst [vmem:[#allocation2 + $0x38] sm:$0xff] %v552_v40 }
 0x145   : > { %v545_v45 = vadd.f32 %v506_v44, %v335_v42 }
 0x146   : > { %v464_v46 = vpop.f32.mrf.mxu2 }
 0x147   : > { %v529_v48 = vpop.f32.mrf.mxu3  ;;  %561 = vst [vmem:[#allocation2 + $0x50] sm:$0xff] %v545_v45 }
 0x148   : > { %v530_v49 = vadd.f32 %v529_v48, %v464_v46 }
 0x14a   : > { %v553_v50 = vadd.f32 %v530_v49, %v343_v47  ;;  %v443_v51 = vpop.f32.mrf.mxu0  ;;  %v508_v53 = vpop.f32.mrf.mxu1 }
 0x14b   : > { %v509_v54 = vadd.f32 %v508_v53, %v443_v51 }
 0x14c   : > { %569 = vst [vmem:[#allocation2 + $0x60] sm:$0xff] %v553_v50 }
 0x14d   : > { %v546_v55 = vadd.f32 %v509_v54, %v336_v52 }
 0x14e   : > { %v467_v56 = vpop.f32.mrf.mxu2 }
 0x14f   : > { %v532_v58 = vpop.f32.mrf.mxu3  ;;  %562 = vst [vmem:[#allocation2 + $0x68] sm:$0xff] %v546_v55 }
 0x150   : > { %v533_v59 = vadd.f32 %v532_v58, %v467_v56 }
 0x152   : > { %v554_v60 = vadd.f32 %v533_v59, %v344_v57  ;;  %v446_v61 = vpop.f32.mrf.mxu0  ;;  %v511_v63 = vpop.f32.mrf.mxu1 }
 0x153   : > { %v512_v0 = vadd.f32 %v511_v63, %v446_v61 }
 0x154   : > { %570 = vst [vmem:[#allocation2 + $0x70] sm:$0xff] %v554_v60 }
 0x155   : > { %v547_v1 = vadd.f32 %v512_v0, %v337_v62 }
 0x156   : > { %v470_v2 = vpop.f32.mrf.mxu2 }
 0x157   : > { %v535_v4 = vpop.f32.mrf.mxu3  ;;  %563 = vst [vmem:[#allocation2 + $0x8] sm:$0xff] %v547_v1 }
 0x158   : > { %v536_v5 = vadd.f32 %v535_v4, %v470_v2 }
 0x15a   : > { %v555_v6 = vadd.f32 %v536_v5, %v345_v3  ;;  %v449_v7 = vpop.f32.mrf.mxu0  ;;  %v514_v9 = vpop.f32.mrf.mxu1 }
 0x15b   : > { %v515_v10 = vadd.f32 %v514_v9, %v449_v7 }
 0x15c   : > { %571 = vst [vmem:[#allocation2 + $0x78] sm:$0xff] %v555_v6 }
 0x15d   : > { %v548_v11 = vadd.f32 %v515_v10, %v338_v8 }
 0x15e   : > { %v473_v12 = vpop.f32.mrf.mxu2 }
 0x15f   : > { %v538_v14 = vpop.f32.mrf.mxu3  ;;  %564 = vst [vmem:[#allocation2 + $0x48] sm:$0xff] %v548_v11 }
 0x160   : > { %v539_v15 = vadd.f32 %v538_v14, %v473_v12  ;;  %576 = sbr.rel (%p856_p6) target bundleno = 378 (0x17a), region = 52 }
 0x162   : > { %v556_v16 = vadd.f32 %v539_v15, %v346_v13 }
 0x164   : > { %572 = vst [vmem:[#allocation2 + $0x28] sm:$0xff] %v556_v16 }
 0x165   : > { %v577_v17 = vld [vmem:[%s1594_s22] sm:$0xff]  ;;  %v609_v18 = vld [vmem:[#allocation2 + $0x30] sm:$0xff]  ;;  %v578_v19 = vld [vmem:[%s1594_s22 + $0x8] sm:$0xff] }
 0x166   : > { %v593_v20 = vmul.f32 3.0, %v577_v17  ;;  %v625_v21 = vmul.f32 2.0, %v609_v18  ;;  %v594_v22 = vmul.f32 3.0, %v578_v19  ;;  %v610_v23 = vld [vmem:[#allocation2] sm:$0xff]  ;;  %v579_v24 = vld [vmem:[%s1594_s22 + $0x10] sm:$0xff]  ;;  %v611_v25 = vld [vmem:[#allocation2 + $0x58] sm:$0xff] }
 0x167   : > { %v626_v26 = vmul.f32 2.0, %v610_v23  ;;  %v595_v27 = vmul.f32 3.0, %v579_v24  ;;  %v627_v28 = vmul.f32 2.0, %v611_v25  ;;  %v580_v29 = vld [vmem:[%s1594_s22 + $0x18] sm:$0xff]  ;;  %v581_v31 = vld [vmem:[%s1594_s22 + $0x20] sm:$0xff]  ;;  %v613_v36 = vld [vmem:[#allocation2 + $0x50] sm:$0xff] }
 0x168   : > { %v612_v30 = vld [vmem:[#allocation2 + $0x18] sm:$0xff]  ;;  %v641_v32 = vadd.f32 %v625_v21, %v593_v20  ;;  %v596_v33 = vmul.f32 3.0, %v580_v29  ;;  %v597_v35 = vmul.f32 3.0, %v581_v31  ;;  %v582_v37 = vld [vmem:[%s1594_s22 + $0x28] sm:$0xff]  ;;  %v629_v41 = vmul.f32 2.0, %v613_v36  ;;  %v583_v43 = vld [vmem:[%s1594_s22 + $0x30] sm:$0xff] }
 0x169   : > { %v628_v34 = vmul.f32 2.0, %v612_v30  ;;  %v614_v38 = vld [vmem:[#allocation2 + $0x68] sm:$0xff]  ;;  %v642_v39 = vadd.f32 %v626_v26, %v594_v22  ;;  %v643_v40 = vadd.f32 %v627_v28, %v595_v27  ;;  %v598_v42 = vmul.f32 3.0, %v582_v37  ;;  %v584_v45 = vld [vmem:[%s1594_s22 + $0x38] sm:$0xff]  ;;  %v585_v51 = vld [vmem:[%s1594_s22 + $0x40] sm:$0xff] }
 0x16a   : > { %v615_v44 = vld [vmem:[#allocation2 + $0x8] sm:$0xff]  ;;  %657 = vst [vmem:[%s1615_s28] sm:$0xff] %v641_v32  ;;  %v630_v47 = vmul.f32 2.0, %v614_v38  ;;  %v599_v48 = vmul.f32 3.0, %v583_v43  ;;  %v617_v52 = vld [vmem:[#allocation2 + $0x40] sm:$0xff]  ;;  %v645_v53 = vadd.f32 %v629_v41, %v597_v35  ;;  %v600_v54 = vmul.f32 3.0, %v584_v45  ;;  %v587_v63 = vld [vmem:[%s1594_s22 + $0x50] sm:$0xff] }
 0x16b   : > { %v644_v46 = vadd.f32 %v628_v34, %v596_v33  ;;  %v631_v49 = vmul.f32 2.0, %v615_v44  ;;  %v616_v50 = vld [vmem:[#allocation2 + $0x48] sm:$0xff]  ;;  %658 = vst [vmem:[%s1615_s28 + $0x8] sm:$0xff] %v642_v39  ;;  %v601_v56 = vmul.f32 3.0, %v585_v51  ;;  %v618_v58 = vld [vmem:[#allocation2 + $0x20] sm:$0xff]  ;;  %v633_v61 = vmul.f32 2.0, %v617_v52 }
 0x16c   : > { %v632_v55 = vmul.f32 2.0, %v616_v50  ;;  %v586_v57 = vld [vmem:[%s1594_s22 + $0x48] sm:$0xff]  ;;  %659 = vst [vmem:[%s1615_s28 + $0x10] sm:$0xff] %v643_v40  ;;  %v646_v59 = vadd.f32 %v630_v47, %v598_v42  ;;  %v619_v0 = vld [vmem:[#allocation2 + $0x10] sm:$0xff]  ;;  %v588_v1 = vld [vmem:[%s1594_s22 + $0x58] sm:$0xff]  ;;  %v634_v3 = vmul.f32 2.0, %v618_v58 }
 0x16d   : > { %v647_v60 = vadd.f32 %v631_v49, %v599_v48  ;;  %v602_v62 = vmul.f32 3.0, %v586_v57  ;;  %660 = vst [vmem:[%s1615_s28 + $0x18] sm:$0xff] %v644_v46  ;;  %v603_v4 = vmul.f32 3.0, %v587_v63  ;;  %v635_v5 = vmul.f32 2.0, %v619_v0  ;;  %v620_v6 = vld [vmem:[#allocation2 + $0x38] sm:$0xff]  ;;  %v589_v7 = vld [vmem:[%s1594_s22 + $0x60] sm:$0xff] }
 0x16e   : > { %v648_v2 = vadd.f32 %v632_v55, %v600_v54  ;;  %661 = vst [vmem:[%s1615_s28 + $0x20] sm:$0xff] %v645_v53  ;;  %v649_v8 = vadd.f32 %v633_v61, %v601_v56  ;;  %v604_v9 = vmul.f32 3.0, %v588_v1  ;;  %v636_v10 = vmul.f32 2.0, %v620_v6  ;;  %v621_v12 = vld [vmem:[#allocation2 + $0x60] sm:$0xff]  ;;  %v590_v13 = vld [vmem:[%s1594_s22 + $0x68] sm:$0xff]  ;;  %v622_v17 = vld [vmem:[#allocation2 + $0x70] sm:$0xff] }
 0x16f   : > { %v605_v11 = vmul.f32 3.0, %v589_v7  ;;  %662 = vst [vmem:[%s1615_s28 + $0x28] sm:$0xff] %v646_v59  ;;  %v650_v14 = vadd.f32 %v634_v3, %v602_v62  ;;  %v637_v15 = vmul.f32 2.0, %v621_v12  ;;  %v606_v16 = vmul.f32 3.0, %v590_v13  ;;  %v591_v18 = vld [vmem:[%s1594_s22 + $0x70] sm:$0xff]  ;;  %v623_v19 = vld [vmem:[#allocation2 + $0x78] sm:$0xff] }
 0x170   : > { %663 = vst [vmem:[%s1615_s28 + $0x30] sm:$0xff] %v647_v60  ;;  %v651_v20 = vadd.f32 %v635_v5, %v603_v4  ;;  %v638_v21 = vmul.f32 2.0, %v622_v17  ;;  %v607_v22 = vmul.f32 3.0, %v591_v18  ;;  %v639_v23 = vmul.f32 2.0, %v623_v19  ;;  %v592_v24 = vld [vmem:[%s1594_s22 + $0x78] sm:$0xff]  ;;  %v624_v25 = vld [vmem:[#allocation2 + $0x28] sm:$0xff] }
 0x171   : > { %664 = vst [vmem:[%s1615_s28 + $0x38] sm:$0xff] %v648_v2  ;;  %v652_v26 = vadd.f32 %v636_v10, %v604_v9  ;;  %v608_v27 = vmul.f32 3.0, %v592_v24  ;;  %v640_v28 = vmul.f32 2.0, %v624_v25  ;;  %v653_v29 = vadd.f32 %v637_v15, %v605_v11 }
 0x172   : > { %665 = vst [vmem:[%s1615_s28 + $0x40] sm:$0xff] %v649_v8  ;;  %v654_v30 = vadd.f32 %v638_v21, %v606_v16  ;;  %v655_v31 = vadd.f32 %v639_v23, %v607_v22 }
 0x173   : > { %666 = vst [vmem:[%s1615_s28 + $0x48] sm:$0xff] %v650_v14  ;;  %v656_v32 = vadd.f32 %v640_v28, %v608_v27 }
 0x174   : > { %667 = vst [vmem:[%s1615_s28 + $0x50] sm:$0xff] %v651_v20 }
 0x175   : > { %668 = vst [vmem:[%s1615_s28 + $0x58] sm:$0xff] %v652_v26 }
 0x176   : > { %669 = vst [vmem:[%s1615_s28 + $0x60] sm:$0xff] %v653_v29 }
 0x177   : > { %670 = vst [vmem:[%s1615_s28 + $0x68] sm:$0xff] %v654_v30 }
 0x178   : > { %671 = vst [vmem:[%s1615_s28 + $0x70] sm:$0xff] %v655_v31 }
 0x179   : > { %672 = vst [vmem:[%s1615_s28 + $0x78] sm:$0xff] %v656_v32 }
 0x17a PF: > { %s1855_s7 = sld [smem:[#allocation17_spill]]  ;;  %s688_s26 = sshll.u32 %s1615_s28, 4  ;;  %s689_s26 = int_to_ptr.vmem [resolvable:$true] %s688_s26 }
 0x17b   : > { %s1856_s30 = sld [smem:[#allocation16_spill]]  ;;  %s674_s1 = scalar_lea.sflag [#allocation5], %s1590_s3 }
 0x17c   : > { %s1858_s21 = sld [smem:[#allocation30_spill]] }
 0x180   : > { %s866_s22 = sshll.u32 %s1855_s7, 5 }
 0x181   : > { %s685_s0 = sadd.s32 %s1856_s30, %s866_s22 }
 0x182   : > { %s860_s29 = sshll.u32 %s685_s0, 3  ;;  %s1859_s10 = smov %s1858_s21 }
 0x183   : > { %s687_s4 = scalar_lea.hbm %s1858_s21, %s860_s29  ;;  %s1170_s28 = scalar_lea.hbm %s1859_s10, 512 }
 0x184   : > { %s690_s5 = sshll.u32 %s687_s4, 4  ;;  %s691_s5 = int_to_ptr.hbm [resolvable:$true] %s690_s5 }
 0x185   : > { %s1164_s12 = sshra.s32 %s691_s5, 4  ;;  %s1165_s12 = int_to_ptr.hbm [resolvable:$true] %s1164_s12 }
 0x186   : > { %s1166_s8 = scalar_lea.hbm %s1165_s12, 128  ;;  %p1171_p3 = scmp.lt.s32.totalorder %s1165_s12, %s1859_s10 }
 0x187   : > { %p1167_p0 = scmp.ne.s32.totalorder %s1165_s12, %s1166_s8  ;;  %p1172_p5 = scmp.lt.s32.totalorder %s1170_s28, %s1166_s8 }
 0x189   : > { %p1168_p2 = pnand %p1167_p0, %p1524_p10  ;;  %p1173_p4 = por %p1172_p5, %p1171_p3 }
 0x18b   : > { %p1169_p12 = pneg %p1168_p2 }
 0x18d   : > { %p1174_p8 = pnand %p1173_p4, %p1169_p12 }
 0x18f   : > { %1177 = shalt.err (!%p1174_p8)
}
 0x190   : > { %s1328_s3 = smov 128   ;;  %s1329_s0 = smov 256  }
 0x191   : > { %s1330_s29 = smov 8  }
 0x192   : > { %905 = dma.vmem_to_hbm [thread:$0]  (%p1524_p10), %s689_s26, 2048, %s691_s5, %s674_s1, %s1328_s3, %s1329_s0, %s1330_s29  }
 0x193 PF: > { %p922_p13 = scmp.ge.s32.totalorder %s1320_s27, 2  ;;  %s705_s2 = sand.u32 1, %s1284_s18  }
 0x194   : > { %s706_s11 = scalar_lea.sflag [#allocation5], %s705_s2 }
 0x195   : > { %p918_p9 = pnand %p922_p13, %p1537_p7 }
 0x197   : > { %p919_p1 = pneg %p918_p9 }
 0x199   : > { %1255 = dma.done.wait (%p919_p1), %s706_s11, 2048  }
 0x19a   : > { %1257 = vsyncadd (%p919_p1), %s706_s11, 4294965248  ;;  %s22_s27 = sadd.s32 1, %s1320_s27   ;;  %s1861_s15 = sld [smem:[#allocation14_spill]] }
 0x19b   : > { %p1737_p11 = scmp.ge.s32.totalorder %s22_s27, 10   ;;  %s1862_s9 = sld [smem:[#allocation26_spill]] }
 0x19c   : > { %s1863_s26 = sld [smem:[#allocation18_spill]]  ;;  %s1867_s12 = smov %s1264_s13 }
 0x19d   : > { %s1864_s4 = sld [smem:[#allocation19_spill]]  ;;  %s1869_s13 = smov %s1268_s14 }
 0x19e   : > { %s1865_s5 = sld [smem:[#allocation22_spill]]  ;;  %s1870_s14 = smov %s1563_s6 }
 0x19f   : > { %s1866_s1 = sld [smem:[#allocation25_spill]]  ;;  %s1871_s16 = smov %s1280_s17 }
 0x1a0   : > { %s1872_s17 = smov %s1547_s23  ;;  %s1873_s18 = smov %s1288_s19 }
 0x1a1   : > { %s1874_s19 = smov %s1292_s20  ;;  %s1875_s20 = smov %s1862_s9 }
 0x1a2   : > { %s1876_s21 = smov %s1308_s24  ;;  %s1877_s22 = smov %s1312_s25 }
 0x1a3   : > { %s1878_s23 = smov %s1863_s26  ;;  %s1879_s24 = smov %s1864_s4 }
 0x1a4   : > { %s1880_s25 = smov %s1865_s5  ;;  %21 = sbr.rel (!%p1737_p11) target bundleno = 18 (0x12), region = 109 }
 0x1a5   : > { %s1881_s26 = smov %s1866_s1 }
 0x1a9   :  { %712 = vsyncpa [#allocation4], 1 }
 0x1aa   :  { %714 = vsyncpa [#allocation4 + $0x1], 1 }
 0x1ab   :  { %715 = vsyncpa [#allocation7], 1 }
 0x1ac   :  { %717 = vsyncpa [#allocation7 + $0x1], 1 }
 0x1ad   :  { %718 = vsyncpa [#allocation5], 1 }
 0x1ae   :  { %720 = vsyncpa [#allocation5 + $0x1], 1 }

</bundles_post_ra>
